<compile_context>
chip_gen: v7x
topology: tpu7x:2x2x1
jax: 0.10.0
libtpu: 0.0.40
codegen_flags: <defaults>
</compile_context>

<pallas_src>
import functools

import jax
import jax.numpy as jnp
from jax.experimental import pallas as pl
from jax.experimental.pallas import tpu as pltpu

_LANE = 128
_SUBLANE = {4: 8, 2: 16, 1: 32}   # sublane packing per dtype itemsize


# ----------------------------- kernels ------------------------------------ #

def _add_pos_2d_kernel(x_ref, pos_ref, o_ref):
    # x_ref: (row_tile, se_tile); pos_ref: (1, se_tile). Pure VPU add,
    # broadcast over the row (batch) axis; purely mem-bound.
    o_ref[...] = x_ref[...] + pos_ref[...]


def _add_pos_3d_kernel(x_ref, pos_ref, o_ref):
    # x_ref: (b_tile, s_tile, E); pos_ref: (s_tile, E). Broadcast over batch.
    o_ref[...] = x_ref[...] + pos_ref[...]


def _index_pos_kernel(x_ref, o_ref, *, s_tile, seq_len):
    # x_ref: (b_tile, s_tile, E). pos is generated on the VPU (free filler
    # under the HBM roofline): pos[s] = (s / seq_len) * 2 - 1.
    s0 = pl.program_id(1) * s_tile
    s_idx = jax.lax.broadcasted_iota(jnp.int32, x_ref.shape, 1) + s0
    pos = s_idx.astype(jnp.float32) * (2.0 / seq_len) - 1.0
    o_ref[...] = x_ref[...] + pos.astype(x_ref.dtype)


# ----------------------------- tiling helpers ----------------------------- #

def _vmem_budgets():
    """(block_budget_bytes, vmem_limit_bytes) derived from the local chip.

    block_budget covers the 4 double-buffered x / out blocks; the (small) pos
    blocks are covered by the headroom between the budget and the limit.
    """
    try:
        cap = int(pltpu.get_tpu_info().vmem_capacity_bytes)
    except Exception:
        cap = 64 * 1024 * 1024            # unknown chip: assume smallest (v7x)
    if cap >= 96 * 1024 * 1024:           # v5e / v6e: 128 MiB physical
        return 40 * 1024 * 1024, 64 * 1024 * 1024
    return 24 * 1024 * 1024, 44 * 1024 * 1024   # v7x: 64 MiB physical


def _pick_tiles_2d(n_rows, n_cols, itemsize, budget):
    """Row/col tiles for a lane-dense (n_rows, n_cols) layout, n_cols % 128 == 0."""
    sub = _SUBLANE.get(itemsize, 8)
    max_block_elems = max(_LANE * sub, budget // (4 * itemsize))

    # Column (lane) tile first: as wide as possible while leaving room for at
    # least one sublane group of rows.
    row_floor = max(1, min(n_rows, sub))
    col_tile = (max_block_elems // row_floor) // _LANE * _LANE
    col_tile = max(_LANE, min(n_cols, col_tile))

    # Row tile: as many rows as still fit; sublane-aligned unless full-extent.
    row_tile = min(n_rows, max(1, max_block_elems // col_tile))
    if row_tile < n_rows:
        row_tile = max(sub, row_tile // sub * sub)   # >= sub by construction
    return row_tile, col_tile


def _ensure_multi_step_2d(n_rows, n_cols, row_tile, col_tile, itemsize):
    """Guarantee >= 2 grid steps so parallel axes can shard over 2 TCs (v7x)."""
    sub = _SUBLANE.get(itemsize, 8)
    if pl.cdiv(n_rows, row_tile) * pl.cdiv(n_cols, col_tile) >= 2:
        return row_tile, col_tile
    if n_cols >= 2 * _LANE:
        col_tile = max(_LANE, (n_cols // 2) // _LANE * _LANE)
    elif n_rows >= 2 * sub:
        row_tile = max(sub, (n_rows // 2) // sub * sub)
    # else: too small to split while keeping aligned blocks; single step.
    return row_tile, col_tile


def _pick_tiles_3d(batch, seq, emb, itemsize, budget):
    """(b_tile, s_tile) for a (B, S, E) layout with full-E blocks."""
    sub = _SUBLANE.get(itemsize, 8)
    max_block_elems = max(sub * emb, budget // (4 * itemsize))

    s_tile = min(seq, max(1, max_block_elems // emb))
    if s_tile < seq:
        s_tile = max(min(seq, sub), s_tile // sub * sub)
    b_tile = min(batch, max(1, max_block_elems // (s_tile * emb)))
    return b_tile, s_tile


def _ensure_multi_step_3d(batch, seq, b_tile, s_tile, itemsize):
    sub = _SUBLANE.get(itemsize, 8)
    if pl.cdiv(batch, b_tile) * pl.cdiv(seq, s_tile) >= 2:
        return b_tile, s_tile
    if batch >= 2:
        b_tile = max(1, batch // 2)       # leading dim: no alignment constraint
    elif seq >= 2 * sub:
        s_tile = max(sub, (seq // 2) // sub * sub)
    return b_tile, s_tile


# ----------------------------- generic add path --------------------------- #

def _add_positional(x, pos_se, *, in_place=False):
    """out = x + pos_se (broadcast over batch). x: (B, S, E); pos_se: (S, E)."""
    B, S, E = x.shape
    SE = S * E
    itemsize = jnp.dtype(x.dtype).itemsize
    budget, vmem_limit = _vmem_budgets()
    aliases = {0: 0} if in_place else {}
    # Note: pos is cast to the activation dtype before the add (one rounding
    # for bf16 activations with f32 pos; matches compute-in-activation-dtype).
    pos_se = pos_se.astype(x.dtype)

    if SE % _LANE == 0:
        # Lane-dense path: flatten to (B, S*E) -> unmasked vst on the last dim.
        x2 = x.reshape(B, SE)
        pos2 = pos_se.reshape(1, SE)
        row_tile, se_tile = _pick_tiles_2d(B, SE, itemsize, budget)
        row_tile, se_tile = _ensure_multi_step_2d(B, SE, row_tile, se_tile, itemsize)
        grid = (pl.cdiv(B, row_tile), pl.cdiv(SE, se_tile))
        out2 = pl.pallas_call(
            _add_pos_2d_kernel,
            out_shape=jax.ShapeDtypeStruct((B, SE), x.dtype),
            grid_spec=pltpu.PrefetchScalarGridSpec(
                num_scalar_prefetch=0,
                grid=grid,
                in_specs=[
                    pl.BlockSpec((row_tile, se_tile), lambda i, j: (i, j)),
                    pl.BlockSpec((1, se_tile), lambda i, j: (0, j)),
                ],
                out_specs=pl.BlockSpec((row_tile, se_tile), lambda i, j: (i, j)),
            ),
            compiler_params=pltpu.CompilerParams(
                dimension_semantics=("parallel", "parallel"),
                vmem_limit_bytes=vmem_limit,
            ),
            input_output_aliases=aliases,
        )(x2, pos2)
        return out2.reshape(B, S, E)

    # Fallback: keep the 3D layout; blocks (b_tile, s_tile, E) with full E.
    # (If E % 128 != 0 this pays masked partial stores; prefer padding E
    #  upstream for real shapes.)
    b_tile, s_tile = _pick_tiles_3d(B, S, E, itemsize, budget)
    b_tile, s_tile = _ensure_multi_step_3d(B, S, b_tile, s_tile, itemsize)
    grid = (pl.cdiv(B, b_tile), pl.cdiv(S, s_tile))
    return pl.pallas_call(
        _add_pos_3d_kernel,
        out_shape=jax.ShapeDtypeStruct((B, S, E), x.dtype),
        grid_spec=pltpu.PrefetchScalarGridSpec(
            num_scalar_prefetch=0,
            grid=grid,
            in_specs=[
                pl.BlockSpec((b_tile, s_tile, E), lambda i, j: (i, j, 0)),
                pl.BlockSpec((s_tile, E), lambda i, j: (j, 0)),
            ],
            out_specs=pl.BlockSpec((b_tile, s_tile, E), lambda i, j: (i, j, 0)),
        ),
        compiler_params=pltpu.CompilerParams(
            dimension_semantics=("parallel", "parallel"),
            vmem_limit_bytes=vmem_limit,
        ),
        input_output_aliases=aliases,
    )(x, pos_se)


# ----------------------------- index mode (fused pos) --------------------- #

def _add_index_positional_fused(x, *, in_place=False):
    """index-mode add with pos generated in-kernel (requires E % 128 == 0)."""
    B, S, E = x.shape
    itemsize = jnp.dtype(x.dtype).itemsize
    budget, vmem_limit = _vmem_budgets()
    b_tile, s_tile = _pick_tiles_3d(B, S, E, itemsize, budget)
    b_tile, s_tile = _ensure_multi_step_3d(B, S, b_tile, s_tile, itemsize)
    grid = (pl.cdiv(B, b_tile), pl.cdiv(S, s_tile))
    kernel = functools.partial(_index_pos_kernel, s_tile=s_tile, seq_len=S)
    return pl.pallas_call(
        kernel,
        out_shape=jax.ShapeDtypeStruct((B, S, E), x.dtype),
        grid_spec=pltpu.PrefetchScalarGridSpec(
            num_scalar_prefetch=0,
            grid=grid,
            in_specs=[pl.BlockSpec((b_tile, s_tile, E), lambda i, j: (i, j, 0))],
            out_specs=pl.BlockSpec((b_tile, s_tile, E), lambda i, j: (i, j, 0)),
        ),
        compiler_params=pltpu.CompilerParams(
            dimension_semantics=("parallel", "parallel"),
            vmem_limit_bytes=vmem_limit,
        ),
        input_output_aliases=({0: 0} if in_place else {}),
    )(x)


# ----------------------------- mode wrappers ------------------------------ #

def positional_encoding_index(x, pos_emb, *, in_place=False):
    """'index' mode. x: (B, S, E); pos_emb: (S, 1) = (arange(S)/S)[:,None]*2-1.

    When E % 128 == 0 the positional term is regenerated in-kernel (no pos
    HBM read, no resident pos VMEM block); otherwise it is broadcast to (S, E)
    and streamed through the generic mem-bound add path.
    """
    B, S, E = x.shape
    if E % _LANE == 0:
        return _add_index_positional_fused(x, in_place=in_place)
    pos_se = jnp.broadcast_to(pos_emb.astype(x.dtype), (S, E))
    return _add_positional(x, pos_se, in_place=in_place)


def positional_encoding_learned(x, w, b, *, in_place=False):
    """'learned' mode. x: (B, S, E); w: (E, S) torch Linear weight; b: (E,)/(1, E).

    eye(S) @ W^T + b == W^T + b, so pos is precomputed with one tiny XLA op
    instead of an in-kernel identity matmul on the MXU.
    """
    B, S, E = x.shape
    pos_se = w.T + b.reshape(1, E)            # (S, E)
    return _add_positional(x, pos_se, in_place=in_place)


# ----------------------------- main ---------------------------------------- #

if __name__ == "__main__":
    key = jax.random.PRNGKey(0)
    kx1, kx2, kw, kb = jax.random.split(key, 4)

    # ---- shape 1: module-default embed_dim (lane-dense; exercises the
    #      in-kernel iota path for "index" and the flattened 2D path for
    #      "learned") ----
    B, S, E = 2, 8, 128          # batch, max_len (== seq_len), embed_dim
    x = jax.random.normal(kx1, (B, S, E), dtype=jnp.float32)

    # "index" mode buffer: (arange(L)/L)[:, None] * 2 - 1
    pos_emb_index = (jnp.arange(S, dtype=jnp.float32) / S)[:, None] * 2.0 - 1.0

    # "learned" mode params: nn.Linear(max_len, embed_dim)
    bound = 1.0 / jnp.sqrt(jnp.float32(S))
    w = jax.random.uniform(kw, (E, S), jnp.float32, -bound, bound)   # torch (out, in)
    b = jax.random.uniform(kb, (1, E), jnp.float32, -bound, bound)
    positions = jnp.eye(S, dtype=jnp.float32)                        # ref only

    out_index = positional_encoding_index(x, pos_emb_index)
    out_learned = positional_encoding_learned(x, w, b)

    # ---- shape 2: small non-128 embed_dim (exercises the lane-density guard
    #      and the 3D fallback path) ----
    B2, S2, E2 = 2, 8, 24
    x2 = jax.random.normal(kx2, (B2, S2, E2), dtype=jnp.float32)
    pos_emb_index2 = (jnp.arange(S2, dtype=jnp.float32) / S2)[:, None] * 2.0 - 1.0
    out_index2 = positional_encoding_index(x2, pos_emb_index2)

    jax.block_until_ready((out_index, out_learned, out_index2))

    # reference checks (plain JAX, mirror the PyTorch forward in eval mode)
    ref_index = x + pos_emb_index
    ref_learned = x + (positions @ w.T + b)[None]
    ref_index2 = x2 + pos_emb_index2
    assert jnp.allclose(out_index, ref_index, atol=1e-5), "index mode mismatch"
    assert jnp.allclose(out_learned, ref_learned, atol=1e-5), "learned mode mismatch"
    assert jnp.allclose(out_index2, ref_index2, atol=1e-5), "index fallback mismatch"

    print("KERNEL_OK")
</pallas_src>

<mosaic_0001>
module attributes {stable_mosaic.version = 11 : i64} {
  func.func @_index_pos_kernel(%arg0: i32, %arg1: i32, %arg2: memref<1x8x128xf32, #tpu.memory_space<vmem>>, %arg3: memref<1x8x128xf32, #tpu.memory_space<vmem>>) attributes {dimension_semantics = [#tpu.dimension_semantics<parallel>, #tpu.dimension_semantics<parallel>], iteration_bounds = array<i64: 2, 1>, scalar_prefetch = 0 : i64, scratch_operands = 0 : i64, tpu.core_type = #tpu.core_type<tc>, window_params = [{transform_indices = @transform_0, window_bounds = array<i64: 1, 8, 128>}, {transform_indices = @transform_1, window_bounds = array<i64: 1, 8, 128>}]} {
    %c8_i32 = arith.constant 8 : i32
    %0 = arith.muli %arg1, %c8_i32 : i32
    %1 = tpu.iota {dimensions = array<i32: 1>} : vector<1x8x128xi32>
    %2 = vector.broadcast %0 : i32 to vector<1x8x128xi32>
    %3 = arith.addi %1, %2 : vector<1x8x128xi32>
    %4 = arith.sitofp %3 : vector<1x8x128xi32> to vector<1x8x128xf32>
    %cst = arith.constant 2.500000e-01 : f32
    %5 = vector.broadcast %cst : f32 to vector<1x8x128xf32>
    %6 = arith.mulf %4, %5 : vector<1x8x128xf32>
    %cst_0 = arith.constant 1.000000e+00 : f32
    %7 = vector.broadcast %cst_0 : f32 to vector<1x8x128xf32>
    %8 = arith.subf %6, %7 : vector<1x8x128xf32>
    %c0 = arith.constant 0 : index
    %c0_1 = arith.constant 0 : index
    %c0_2 = arith.constant 0 : index
    %9 = vector.load %arg2[%c0, %c0_1, %c0_2] : memref<1x8x128xf32, #tpu.memory_space<vmem>>, vector<1x8x128xf32>
    %10 = arith.addf %9, %8 : vector<1x8x128xf32>
    %c0_3 = arith.constant 0 : index
    %c0_4 = arith.constant 0 : index
    %c0_5 = arith.constant 0 : index
    %11 = vector.load %arg3[%c0_3, %c0_4, %c0_5] : memref<1x8x128xf32, #tpu.memory_space<vmem>>, vector<1x8x128xf32>
    tpu.vector_store %arg3[%c0_3, %c0_4, %c0_5], %10 {strides = array<i32>} : memref<1x8x128xf32, #tpu.memory_space<vmem>>, vector<1x8x128xf32>,
    return
  }
  func.func @transform_0(%arg0: i32, %arg1: i32) -> (i32, i32, i32) {
    %c0_i32 = arith.constant 0 : i32
    %c0_i32_0 = arith.constant 0 : i32
    return %arg0, %arg1, %c0_i32 : i32, i32, i32
  }
  func.func @transform_1(%arg0: i32, %arg1: i32) -> (i32, i32, i32) {
    %c0_i32 = arith.constant 0 : i32
    %c0_i32_0 = arith.constant 0 : i32
    return %arg0, %arg1, %c0_i32 : i32, i32, i32
  }
}

</mosaic_0001>

<bundles_post_ra>
// kernel: tpu_custom_call.1
= control target key start
LH: loop header
LB: loop body
LE: loop exit
PB: predicated region body
PF: predicated region fallthrough
CT: control target
= control target key end

     0   :  { %6 = vsyncpa [#allocation3], 0  ;;  %s629_s0 = inlined_call_operand.hbm [shape: f32[2,8,128], index: 0, kind: input, shape index: {}]   ;;  %s630_s1 = inlined_call_operand.hbm [shape: f32[2,8,128], index: 1, kind: output, shape index: {}]  }
   0x1   :  { %8 = vsyncpa [#allocation3 + $0x1], 0 }
   0x2   :  { %9 = vsyncpa [#allocation4], 0 }
   0x3   :  { %11 = vsyncpa [#allocation4 + $0x1], 0  ;;  %s457_s6 = smov 0   ;;  %s459_s7 = smov 0  }
   0x4   :  { %s461_s8 = smov 0   ;;  %s463_s9 = smov 0  }
   0x5   :  { %s465_s10 = smov 0   ;;  %s467_s11 = smov 0  }
   0x6 LB: > { %s255_s12 = sadd.s32 4294967295, %s443_s11   ;;  %s256_s13 = sadd.s32 4294967294, %s443_s11   ;;  %s443_s11 = sphi %s467_s11, %s17_s11   ;;  %s439_s10 = sphi %s465_s10, %s646_s10   ;;  %s435_s9 = sphi %s463_s9, %s645_s9   ;;  %s431_s8 = sphi %s461_s8, %s644_s8   ;;  %s427_s7 = sphi %s459_s7, %s643_s7   ;;  %s423_s6 = sphi %s457_s6, %s642_s6  }
   0x7   : > { %s29_s14 = sadd.s32 1, %s439_s10  ;;  %s38_s15 = sadd.s32 1, %s431_s8 }
   0x8   : > { %p31_p0 = scmp.ge.s32.totalorder %s29_s14, 2  ;;  %p45_p1 = scmp.ne.s32.totalorder %s431_s8, %s427_s7 }
   0x9   : > { %p46_p2 = scmp.eq.s32.totalorder %s443_s11, 0  ;;  %p51_p3 = scmp.ne.s32.totalorder %s427_s7, %s423_s6 }
   0xa   : > { %s648_s14 = smov (%p31_p0, %s29_s14), 0  ;;  %p52_p5 = scmp.eq.s32.totalorder %s255_s12, 0 }
   0xb   : > { %p498_p4 = por %p46_p2, %p45_p1  ;;  %s33_s17 = ssub.s32 %s439_s10, %s648_s14 }
   0xc   : > { %p77_p6 = scmp.eq.s32.totalorder %s255_s12, 1  ;;  %p36_p7 = scmp.eq.s32.totalorder %s33_s17, 0 }
   0xd   : > { %p504_p8 = por %p52_p5, %p51_p3  ;;  %p83_p10 = scmp.eq.s32.totalorder %s256_s13, 1 }
   0xe   : > { %p508_p9 = por %p77_p6, %p45_p1  ;;  %p281_p13 = scmp.lt.s32.totalorder %s443_s11, 2 }
   0xf   : > { %s513_s20 = scalar_select %p36_p7, %s431_s8, %s38_s15  }
  0x10   : > { %s634_s19 = scalar_select %p508_p9, 1, 0 }
  0x11   : > { %p515_p11 = por %p83_p10, %p51_p3  ;;  %s103_s22 = sand.u32 1, %s431_s8  }
  0x12   : > { %s259_s23 = sshll.u32 %s103_s22, 3  ;;  %s260_s24 = sshll.u32 %s439_s10, 7 }
  0x13   : > { %s635_s21 = scalar_select %p515_p11, 1, 0 }
  0x14   : > { %s526_s27 = scalar_lea.hbm %s629_s0, %s260_s24  ;;  %s107_s28 = scalar_lea.vmem [#allocation2], %s259_s23 }
  0x15   : > { %s115_s29 = sshll.u32 %s107_s28, 4  ;;  %p532_p0 = pnand %p281_p13, %p498_p4  ;;  %s528_s29 = int_to_ptr.vmem [resolvable:$true] %s115_s29 }
  0x16   : > { %s104_s2 = scalar_lea.sflag [#allocation3], %s103_s22  ;;  %s331_s3 = scalar_lea.hbm %s526_s27, 128 }
  0x17   : > { %p332_p3 = scmp.ne.s32.totalorder %s526_s27, %s331_s3  ;;  %p333_p5 = pneg %p532_p0 }
  0x18   : > { %s336_s12 = scalar_lea.hbm %s629_s0, 256  ;;  %p337_p4 = scmp.lt.u32.totalorder %s526_s27, %s629_s0 }
  0x19   : > { %p334_p6 = pnand %p333_p5, %p332_p3  ;;  %p338_p10 = scmp.lt.u32.totalorder %s336_s12, %s331_s3 }
  0x1a   : > { %p340_p12 = scmp.lt.u32.totalorder %s331_s3, %s526_s27 }
  0x1b   : > { %p335_p7 = pneg %p334_p6  ;;  %p339_p13 = por %p338_p10, %p337_p4 }
  0x1d   : > { %p341_p1 = por %p340_p12, %p339_p13 }
  0x1f   : > { %p342_p2 = pnand %p341_p1, %p335_p7 }
  0x21   : > { %345 = shalt.err (!%p342_p2)
}
  0x22   : > { %s346_s16 = scalar_lea.vmem %s528_s29, 128  ;;  %s445_s17 = smov [#allocation2]  }
  0x23   : > { %p347_p3 = scmp.ne.s32.totalorder %s528_s29, %s346_s16  ;;  %s351_s22 = sshll.u32 %s445_s17, 4  ;;  %s352_s22 = int_to_ptr.vmem [resolvable:$false] %s351_s22 }
  0x24   : > { %s353_s23 = scalar_lea.vmem %s352_s22, 256  ;;  %p354_p9 = scmp.lt.s32.totalorder %s528_s29, %s352_s22 }
  0x25   : > { %p349_p6 = pnand %p347_p3, %p333_p5  ;;  %p355_p4 = scmp.lt.s32.totalorder %s353_s23, %s346_s16 }
  0x27   : > { %p350_p11 = pneg %p349_p6  ;;  %p356_p10 = por %p355_p4, %p354_p9 }
  0x29   : > { %p357_p12 = pnand %p356_p10, %p350_p11 }
  0x2b   : > { %360 = shalt.err (!%p357_p12)
}
  0x2c   : > { %276 = dma.hbm_to_vmem [thread:$0]  (!%p532_p0), %s526_s27, 128, %s528_s29, %s104_s2  }
  0x2d   : > { %p637_p1 = scmp.lt.s32.totalorder %s443_s11, 3  ;;  %p638_p2 = scmp.ge.s32.totalorder %s443_s11, 1 }
  0x2f   : > { %p121_p5 = pnand %p638_p2, %p637_p1 }
  0x30   : > { %s568_s24 = sand.u32 (!%p121_p5), 1, %s427_s7  }
  0x31   : > { %124 = sbr.rel (%p121_p5) target bundleno = 83 (0x53), region = 24  ;;  %s262_s25 = sshll.u32 (!%p121_p5), %s568_s24, 3 }
  0x32   : > { %s127_s26 = scalar_lea.sflag (!%p121_p5), [#allocation3], %s568_s24  ;;  %s130_s28 = scalar_lea.vmem (!%p121_p5), [#allocation2], %s262_s25 }
  0x38   : > { %414 = dma.done.wait (%p504_p8), %s127_s26, 128  }
  0x39   : > { %416 = vsyncadd (%p504_p8), %s127_s26, 4294967168  ;;  %v150_v0 = vlaneseq  ;;  %v157_v4 = vld [vmem:[%s130_s28] sm:$0xff]  ;;  %s148_s27 = scalar_lea.vmem [#allocation5], %s262_s25  ;;  %s266_s30 = sshll.u32 %s435_s9, 7 }
  0x3a   : > { %s175_s29 = sshll.u32 %s148_s27, 4  ;;  %s582_s18 = scalar_lea.hbm %s630_s1, %s266_s30  ;;  %s577_s29 = int_to_ptr.vmem [resolvable:$true] %s175_s29 }
  0x3b   : > { %v151_v1 = vshrl.u32 %v150_v0, 7  ;;  %s161_s4 = scalar_lea.sflag [#allocation4], %s568_s24  ;;  %s361_s5 = scalar_lea.vmem %s577_s29, 128 }
  0x3c   : > { %p362_p8 = scmp.ne.s32.totalorder %s577_s29, %s361_s5  ;;  %p639_p9 = scmp.ne.s32.totalorder %s634_s19, 0 }
  0x3d   : > { %v154_v2 = vcvt.s32.f32 %v151_v1  ;;  %s446_s9 = smov [#allocation5]  }
  0x3e   : > { %p363_p11 = pnand %p362_p8, %p639_p9  ;;  %s365_s12 = sshll.u32 %s446_s9, 4  ;;  %s366_s12 = int_to_ptr.vmem [resolvable:$false] %s365_s12 }
  0x3f   : > { %v155_v3 = vmul.f32 0.25, %v154_v2  ;;  %s367_s13 = scalar_lea.vmem %s366_s12, 256  ;;  %p368_p7 = scmp.lt.s32.totalorder %s577_s29, %s366_s12 }
  0x40   : > { %p364_p0 = pneg %p363_p11  ;;  %p369_p13 = scmp.lt.s32.totalorder %s367_s13, %s361_s5 }
  0x41   : > { %v264_v5 = vadd.f32 -1.0, %v155_v3 }
  0x42   : > { %p370_p3 = por %p369_p13, %p368_p7 }
  0x43   : > { %v158_v6 = vadd.f32 %v264_v5, %v157_v4 }
  0x44   : > { %p371_p6 = pnand %p370_p3, %p364_p0 }
  0x45   : > { %159 = vst [vmem:[%s148_s27] sm:$0xff] %v158_v6 }
  0x46   : > { %374 = shalt.err (!%p371_p6)
}
  0x47   : > { %s375_s15 = scalar_lea.hbm %s582_s18, 128  ;;  %s379_s22 = scalar_lea.hbm %s630_s1, 256 }
  0x48   : > { %p376_p4 = scmp.ne.s32.totalorder %s582_s18, %s375_s15  ;;  %p380_p1 = scmp.lt.u32.totalorder %s582_s18, %s630_s1 }
  0x49   : > { %p381_p2 = scmp.lt.u32.totalorder %s379_s22, %s375_s15  ;;  %p383_p8 = scmp.lt.u32.totalorder %s375_s15, %s582_s18 }
  0x4a   : > { %p377_p10 = pnand %p376_p4, %p639_p9 }
  0x4b   : > { %p382_p5 = por %p381_p2, %p380_p1 }
  0x4c   : > { %p378_p12 = pneg %p377_p10 }
  0x4d   : > { %p384_p11 = por %p383_p8, %p382_p5 }
  0x4f   : > { %p385_p0 = pnand %p384_p11, %p378_p12 }
  0x51   : > { %388 = shalt.err (!%p385_p0)
}
  0x52   : > { %271 = dma.vmem_to_hbm [thread:$0]  (%p639_p9), %s577_s29, 128, %s582_s18, %s161_s4  }
  0x53 PF: > { %s187_s25 = sand.u32 1, %s423_s6   ;;  %p640_p7 = scmp.ne.s32.totalorder %s635_s21, 0 }
  0x54   : > { %p641_p13 = scmp.ge.s32.totalorder %s443_s11, 2  ;;  %s188_s26 = scalar_lea.sflag [#allocation4], %s187_s25 }
  0x56   : > { %p278_p3 = pnand %p641_p13, %p640_p7 }
  0x58   : > { %418 = dma.done.wait (!%p278_p3), %s188_s26, 128  }
  0x59   : > { %420 = vsyncadd (!%p278_p3), %s188_s26, 4294967168  ;;  %s17_s11 = sadd.s32 1, %s443_s11   ;;  %s642_s6 = smov %s427_s7 }
  0x5a   : > { %p14_p6 = scmp.ge.s32.totalorder %s17_s11, 4   ;;  %s643_s7 = smov %s431_s8 }
  0x5b   : > { %s644_s8 = smov %s513_s20  ;;  %s645_s9 = smov %s439_s10 }
  0x5c   : > { %s646_s10 = smov %s648_s14  ;;  %16 = sbr.rel (!%p14_p6) target bundleno = 6 (0x6), region = 69 }
  0x63   :  { %193 = vsyncpa [#allocation3], 1 }
  0x64   :  { %195 = vsyncpa [#allocation3 + $0x1], 1 }
  0x65   :  { %196 = vsyncpa [#allocation4], 1 }
  0x66   :  { %198 = vsyncpa [#allocation4 + $0x1], 1 }

</bundles_post_ra>
